<compile_context>
chip_gen: v7x
topology: tpu7x:2x2x1
jax: 0.10.0
libtpu: 0.0.40
codegen_flags: <defaults>
</compile_context>

<pallas_src>
import jax
import jax.numpy as jnp
from jax.experimental import pallas as pl
from jax.experimental.pallas import tpu as pltpu


def _round_up(x, m):
    return ((x + m - 1) // m) * m


# ---------------------------------------------------------------------------
# Path A: tables resident in VMEM, one-hot gather + reduction on the MXU.
# ---------------------------------------------------------------------------
def mf_resident_kernel(ids_ref,     # (TB, 2) int32 VMEM: [:,0]=user id, [:,1]=item id
                       utab_ref,    # (U_pad, D) VMEM (resident)
                       itab_ref,    # (I_pad, D) VMEM (resident)
                       w_ref,       # (2, D) f32 VMEM: row0 = Wu, row1 = Wi
                       b_ref,       # (1,) f32 SMEM
                       out_ref):    # (1, TB) f32 VMEM lane-dense scores
    TB = ids_ref.shape[0]
    U = utab_ref.shape[0]
    I = itab_ref.shape[0]

    bias = b_ref[0]

    uid = ids_ref[:, 0:1]                         # (TB, 1)
    iid = ids_ref[:, 1:2]                         # (TB, 1)

    utab = utab_ref[...].astype(jnp.float32)      # (U, D)
    itab = itab_ref[...].astype(jnp.float32)      # (I, D)
    wu = w_ref[0:1, :]                            # (1, D)
    wi = w_ref[1:2, :]                            # (1, D)

    # One-hot row selectors (batch on sublanes, table row on lanes).
    oh_u = (jax.lax.broadcasted_iota(jnp.int32, (TB, U), 1) == uid).astype(jnp.float32)
    oh_i = (jax.lax.broadcasted_iota(jnp.int32, (TB, I), 1) == iid).astype(jnp.float32)

    # Gather on the MXU: u[b, :] = utab[uid[b], :]   (standard (M,K)x(K,N)).
    dn_gather = (((1,), (0,)), ((), ()))
    u = jax.lax.dot_general(oh_u, utab, dn_gather,
                            preferred_element_type=jnp.float32)    # (TB, D)
    it = jax.lax.dot_general(oh_i, itab, dn_gather,
                             preferred_element_type=jnp.float32)   # (TB, D)

    # Linear(2D -> 1) on cat([u, it]) == Wu.u^T + Wi.it^T + b, directly (1, TB)
    # (transpose_rhs form, no XLU transpose, batch stays on lanes).
    dn_proj = (((1,), (1,)), ((), ()))
    s = (jax.lax.dot_general(wu, u, dn_proj, preferred_element_type=jnp.float32)
         + jax.lax.dot_general(wi, it, dn_proj, preferred_element_type=jnp.float32)
         + bias)                                                    # (1, TB)
    out_ref[...] = 1.0 / (1.0 + jnp.exp(-s))       # exp on the EUP


# ---------------------------------------------------------------------------
# Path B: tables in HBM, double-buffered row-gather DMAs, one wait per buffer.
# ---------------------------------------------------------------------------
def mf_gather_kernel(uid_ref, iid_ref,      # scalar prefetch (SMEM int32 [B_pad])
                     utab_hbm, itab_hbm,    # embedding tables left in HBM (ANY)
                     w_ref,                 # (2, D) f32 VMEM
                     b_ref,                 # (1,) f32 SMEM
                     out_ref,               # (1, TB) f32 VMEM
                     ubuf, ibuf,            # (2, TB, D) VMEM double buffers
                     sem):                  # (2, 2) DMA semaphores [table, slot]
    TB = ubuf.shape[1]
    g = pl.program_id(0)
    G = pl.num_programs(0)
    slot = g & 1

    # Hoist SMEM scalar reads above the DMA waits (.wait() breaks sst->sld fwd).
    bias = b_ref[0]

    def issue(tile, s_):
        base = tile * TB

        @pl.loop(0, TB)
        def _(r):
            u_row = uid_ref[base + r]
            i_row = iid_ref[base + r]
            pltpu.make_async_copy(utab_hbm.at[pl.ds(u_row, 1), :],
                                  ubuf.at[s_, pl.ds(r, 1), :],
                                  sem.at[0, s_]).start()
            pltpu.make_async_copy(itab_hbm.at[pl.ds(i_row, 1), :],
                                  ibuf.at[s_, pl.ds(r, 1), :],
                                  sem.at[1, s_]).start()

    # Prime the pipeline with tile 0, then keep the next tile in flight while
    # the current one is computed (manual P4 double buffer across grid steps).
    @pl.when(g == 0)
    def _():
        issue(0, 0)

    @pl.when(g + 1 < G)
    def _():
        issue(g + 1, 1 - slot)

    # ONE wait per buffer: each descriptor below covers the whole (TB, D) tile,
    # i.e. exactly the byte total of the TB one-row DMAs signalled on that
    # semaphore (same dtype, same row size) -- no per-row scalar waits.
    pltpu.make_async_copy(ubuf.at[slot], ubuf.at[slot], sem.at[0, slot]).wait()
    pltpu.make_async_copy(ibuf.at[slot], ibuf.at[slot], sem.at[1, slot]).wait()

    u = ubuf[slot].astype(jnp.float32)            # (TB, D)
    it = ibuf[slot].astype(jnp.float32)           # (TB, D)
    wu = w_ref[0:1, :]
    wi = w_ref[1:2, :]
    dn_proj = (((1,), (1,)), ((), ()))
    s = (jax.lax.dot_general(wu, u, dn_proj, preferred_element_type=jnp.float32)
         + jax.lax.dot_general(wi, it, dn_proj, preferred_element_type=jnp.float32)
         + bias)                                  # (1, TB)
    out_ref[...] = 1.0 / (1.0 + jnp.exp(-s))


# ---------------------------------------------------------------------------
# Wrapper
# ---------------------------------------------------------------------------
def mf_forward(user_id, item_id, user_emb, item_emb, w, bias, *,
               force_hbm_gather=False):
    """Pallas MFNet forward. Returns sigmoid scores of shape [B] (float32)."""
    B = int(user_id.shape[0])
    U, D = user_emb.shape
    I, _ = item_emb.shape

    # Batch tiling: lane-dense tiles of at least 128; for larger batches keep
    # TB <= 512 and at least two grid steps so v7x's two TCs both get work.
    B_pad = _round_up(max(B, 1), 128)
    if B_pad <= 128:
        TB = 128
    else:
        TB = min(512, _round_up(B_pad // 2, 128))
        B_pad = _round_up(B_pad, TB)
    G = B_pad // TB

    # nn.Embedding errors on OOB ids; a Pallas DMA / one-hot silently reads
    # garbage or zero, so clip.  Padded tail rows read row 0; their scores are
    # sliced off below.
    uid = jnp.clip(user_id.astype(jnp.int32), 0, U - 1)
    iid = jnp.clip(item_id.astype(jnp.int32), 0, I - 1)
    uid = jnp.pad(uid, (0, B_pad - B))
    iid = jnp.pad(iid, (0, B_pad - B))

    # Linear(2D -> 1) on cat([u, i]) decomposed as W = [Wu | Wi] -> (2, D).
    w2 = jnp.concatenate([w[:, :D], w[:, D:]], axis=0).astype(jnp.float32)
    b1 = bias.reshape(1).astype(jnp.float32)

    # Resident fast path only when both tables (plus the one-hot intermediates)
    # comfortably fit scoped VMEM on every generation (v7x has half the VMEM
    # of v5e/v6e); otherwise fall back to HBM row-gather.
    table_f32_bytes = (U + I) * D * 4
    resident = (not force_hbm_gather
                and max(U, I) <= 2048
                and table_f32_bytes <= (4 << 20))

    if resident:
        U_pad = _round_up(U, 8)
        I_pad = _round_up(I, 8)
        utab = jnp.pad(user_emb, ((0, U_pad - U), (0, 0)))
        itab = jnp.pad(item_emb, ((0, I_pad - I), (0, 0)))
        ids = jnp.stack([uid, iid], axis=1)                   # (B_pad, 2)

        out = pl.pallas_call(
            mf_resident_kernel,
            out_shape=jax.ShapeDtypeStruct((1, B_pad), jnp.float32),
            grid_spec=pltpu.PrefetchScalarGridSpec(
                num_scalar_prefetch=0,
                grid=(G,),
                in_specs=[
                    pl.BlockSpec((TB, 2), lambda g: (g, 0)),
                    pl.BlockSpec((U_pad, D), lambda g: (0, 0)),   # resident
                    pl.BlockSpec((I_pad, D), lambda g: (0, 0)),   # resident
                    pl.BlockSpec((2, D), lambda g: (0, 0)),
                    pl.BlockSpec(memory_space=pltpu.MemorySpace.SMEM),
                ],
                out_specs=pl.BlockSpec((1, TB), lambda g: (0, g)),
            ),
            compiler_params=pltpu.CompilerParams(
                dimension_semantics=("parallel",)),   # v7x: split batch over TCs
        )(ids, utab, itab, w2, b1)
    else:
        out = pl.pallas_call(
            mf_gather_kernel,
            out_shape=jax.ShapeDtypeStruct((1, B_pad), jnp.float32),
            grid_spec=pltpu.PrefetchScalarGridSpec(
                num_scalar_prefetch=2,                # user ids, item ids -> SMEM
                grid=(G,),
                in_specs=[
                    pl.BlockSpec(memory_space=pl.ANY),    # user table stays in HBM
                    pl.BlockSpec(memory_space=pl.ANY),    # item table stays in HBM
                    pl.BlockSpec((2, D), lambda g, u, i: (0, 0)),
                    pl.BlockSpec(memory_space=pltpu.MemorySpace.SMEM),
                ],
                out_specs=pl.BlockSpec((1, TB), lambda g, u, i: (0, g)),
                scratch_shapes=[
                    pltpu.VMEM((2, TB, D), user_emb.dtype),
                    pltpu.VMEM((2, TB, D), item_emb.dtype),
                    pltpu.SemaphoreType.DMA((2, 2)),
                ],
            ),
            # Cross-tile double buffering carries DMA state across grid steps,
            # so this axis must stay sequential.
            compiler_params=pltpu.CompilerParams(
                dimension_semantics=("arbitrary",)),
        )(uid, iid, user_emb, item_emb, w2, b1)

    return out[0, :B]                                 # squeeze(dim=-1)


if __name__ == "__main__":
    user_num, item_num, latent_dim = 16, 12, 32
    batch = 8

    key = jax.random.PRNGKey(0)
    k_ue, k_ie, k_w, k_b, k_uid, k_iid = jax.random.split(key, 6)

    # Parameter init mirroring nn.Embedding (N(0,1)) and nn.Linear
    # (uniform(-1/sqrt(fan_in), 1/sqrt(fan_in))).
    user_emb = jax.random.normal(k_ue, (user_num, latent_dim), jnp.float32)
    item_emb = jax.random.normal(k_ie, (item_num, latent_dim), jnp.float32)
    bound = 1.0 / (2.0 * latent_dim) ** 0.5
    w = jax.random.uniform(k_w, (1, 2 * latent_dim), jnp.float32, -bound, bound)
    bias = jax.random.uniform(k_b, (1,), jnp.float32, -bound, bound)

    user_id = jax.random.randint(k_uid, (batch,), 0, user_num, jnp.int32)
    item_id = jax.random.randint(k_iid, (batch,), 0, item_num, jnp.int32)

    # Pure-JAX reference (elementwise f32 reduction, no MXU involved).
    u = user_emb[user_id]
    it = item_emb[item_id]
    logits = (jnp.sum(u * w[0, :latent_dim], axis=-1)
              + jnp.sum(it * w[0, latent_dim:], axis=-1) + bias[0])
    ref = jax.nn.sigmoid(logits)

    # Resident path (VMEM tables + MXU one-hot gather) -- the default here.
    out = jax.block_until_ready(
        mf_forward(user_id, item_id, user_emb, item_emb, w, bias))
    assert out.shape == (batch,)
    # 5e-3 tolerance covers a possible bf16-pass f32 MXU mode; observed error
    # is ~1e-6 when the MXU runs full-precision f32 passes.
    assert jnp.allclose(out, ref, atol=5e-3, rtol=0), (out, ref)

    # Forced HBM row-gather fallback, to exercise the double-buffered DMA path.
    out2 = jax.block_until_ready(
        mf_forward(user_id, item_id, user_emb, item_emb, w, bias,
                   force_hbm_gather=True))
    assert out2.shape == (batch,)
    assert jnp.allclose(out2, ref, atol=5e-3, rtol=0), (out2, ref)

    print("KERNEL_OK")
</pallas_src>

<mosaic_0001>
module attributes {stable_mosaic.version = 11 : i64} {
  func.func @mf_resident_kernel(%arg0: i32, %arg1: memref<128x2xi32, #tpu.memory_space<vmem>>, %arg2: memref<16x32xf32, #tpu.memory_space<vmem>>, %arg3: memref<16x32xf32, #tpu.memory_space<vmem>>, %arg4: memref<2x32xf32, #tpu.memory_space<vmem>>, %arg5: memref<1xf32, #tpu.memory_space<smem>>, %arg6: memref<1x128xf32, #tpu.memory_space<vmem>>) attributes {dimension_semantics = [#tpu.dimension_semantics<parallel>], iteration_bounds = array<i64: 1>, scalar_prefetch = 0 : i64, scratch_operands = 0 : i64, tpu.core_type = #tpu.core_type<tc>, window_params = [{transform_indices = @transform_0, window_bounds = array<i64: 128, 2>}, {pipeline_mode = #tpu.pipeline_mode<synchronous>, transform_indices = @transform_1, window_bounds = array<i64: 16, 32>}, {pipeline_mode = #tpu.pipeline_mode<synchronous>, transform_indices = @transform_2, window_bounds = array<i64: 16, 32>}, {pipeline_mode = #tpu.pipeline_mode<synchronous>, transform_indices = @transform_3, window_bounds = array<i64: 2, 32>}, {transform_indices = @transform_4, window_bounds = array<i64: 1>}, {transform_indices = @transform_5, window_bounds = array<i64: 1, 128>}]} {
    %c0 = arith.constant 0 : index
    %0 = memref.load %arg5[%c0] : memref<1xf32, #tpu.memory_space<smem>>
    %c0_0 = arith.constant 0 : index
    %c0_1 = arith.constant 0 : index
    %1 = vector.load %arg1[%c0_0, %c0_1] : memref<128x2xi32, #tpu.memory_space<vmem>>, vector<128x1xi32>
    %c0_2 = arith.constant 0 : index
    %c1 = arith.constant 1 : index
    %2 = vector.load %arg1[%c0_2, %c1] : memref<128x2xi32, #tpu.memory_space<vmem>>, vector<128x1xi32>
    %c0_3 = arith.constant 0 : index
    %c0_4 = arith.constant 0 : index
    %3 = vector.load %arg2[%c0_3, %c0_4] : memref<16x32xf32, #tpu.memory_space<vmem>>, vector<16x32xf32>
    %c0_5 = arith.constant 0 : index
    %c0_6 = arith.constant 0 : index
    %4 = vector.load %arg3[%c0_5, %c0_6] : memref<16x32xf32, #tpu.memory_space<vmem>>, vector<16x32xf32>
    %c0_7 = arith.constant 0 : index
    %c0_8 = arith.constant 0 : index
    %5 = vector.load %arg4[%c0_7, %c0_8] : memref<2x32xf32, #tpu.memory_space<vmem>>, vector<1x32xf32>
    %c1_9 = arith.constant 1 : index
    %c0_10 = arith.constant 0 : index
    %6 = vector.load %arg4[%c1_9, %c0_10] : memref<2x32xf32, #tpu.memory_space<vmem>>, vector<1x32xf32>
    %7 = tpu.iota {dimensions = array<i32: 1>} : vector<128x16xi32>
    %8 = vector.broadcast %1 : vector<128x1xi32> to vector<128x16xi32>
    %9 = arith.cmpi eq, %7, %8 : vector<128x16xi32>
    %10 = arith.extui %9 : vector<128x16xi1> to vector<128x16xi32>
    %11 = arith.sitofp %10 : vector<128x16xi32> to vector<128x16xf32>
    %12 = tpu.iota {dimensions = array<i32: 1>} : vector<128x16xi32>
    %13 = vector.broadcast %2 : vector<128x1xi32> to vector<128x16xi32>
    %14 = arith.cmpi eq, %12, %13 : vector<128x16xi32>
    %15 = arith.extui %14 : vector<128x16xi1> to vector<128x16xi32>
    %16 = arith.sitofp %15 : vector<128x16xi32> to vector<128x16xf32>
    %cst = arith.constant dense<0.000000e+00> : vector<128x32xf32>
    %17 = tpu.matmul %11, %3, %cst {dimension_numbers = #tpu.dot_dimension_numbers<[1], [0], [0], [1], [0, 0, 1, 1], [], []>} : vector<128x16xf32>, vector<16x32xf32>, vector<128x32xf32> -> vector<128x32xf32>
    %cst_11 = arith.constant dense<0.000000e+00> : vector<128x32xf32>
    %18 = tpu.matmul %16, %4, %cst_11 {dimension_numbers = #tpu.dot_dimension_numbers<[1], [0], [0], [1], [0, 0, 1, 1], [], []>} : vector<128x16xf32>, vector<16x32xf32>, vector<128x32xf32> -> vector<128x32xf32>
    %cst_12 = arith.constant dense<0.000000e+00> : vector<1x128xf32>
    %19 = tpu.matmul %5, %17, %cst_12 {dimension_numbers = #tpu.dot_dimension_numbers<[1], [1], [0], [0], [0, 0, 1, 0], [], []>} : vector<1x32xf32>, vector<128x32xf32>, vector<1x128xf32> -> vector<1x128xf32>
    %cst_13 = arith.constant dense<0.000000e+00> : vector<1x128xf32>
    %20 = tpu.matmul %6, %18, %cst_13 {dimension_numbers = #tpu.dot_dimension_numbers<[1], [1], [0], [0], [0, 0, 1, 0], [], []>} : vector<1x32xf32>, vector<128x32xf32>, vector<1x128xf32> -> vector<1x128xf32>
    %21 = arith.addf %19, %20 : vector<1x128xf32>
    %22 = vector.broadcast %0 : f32 to vector<1x128xf32>
    %23 = arith.addf %21, %22 : vector<1x128xf32>
    %cst_14 = arith.constant 0.000000e+00 : f32
    %24 = vector.broadcast %cst_14 : f32 to vector<1x128xf32>
    %25 = arith.subf %24, %23 : vector<1x128xf32>
    %26 = math.exp %25 : vector<1x128xf32>
    %cst_15 = arith.constant 1.000000e+00 : f32
    %27 = vector.broadcast %cst_15 : f32 to vector<1x128xf32>
    %28 = arith.addf %27, %26 : vector<1x128xf32>
    %cst_16 = arith.constant 1.000000e+00 : f32
    %29 = vector.broadcast %cst_16 : f32 to vector<1x128xf32>
    %30 = arith.divf %29, %28 : vector<1x128xf32>
    %c0_17 = arith.constant 0 : index
    %c0_18 = arith.constant 0 : index
    %31 = vector.load %arg6[%c0_17, %c0_18] : memref<1x128xf32, #tpu.memory_space<vmem>>, vector<1x128xf32>
    tpu.vector_store %arg6[%c0_17, %c0_18], %30 {strides = array<i32>} : memref<1x128xf32, #tpu.memory_space<vmem>>, vector<1x128xf32>,
    return
  }
  func.func @transform_0(%arg0: i32) -> (i32, i32) {
    %c0_i32 = arith.constant 0 : i32
    %c0_i32_0 = arith.constant 0 : i32
    return %arg0, %c0_i32 : i32, i32
  }
  func.func @transform_1(%arg0: i32) -> (i32, i32) {
    %c0_i32 = arith.constant 0 : i32
    %c0_i32_0 = arith.constant 0 : i32
    %c0_i32_1 = arith.constant 0 : i32
    return %c0_i32, %c0_i32_0 : i32, i32
  }
  func.func @transform_2(%arg0: i32) -> (i32, i32) {
    %c0_i32 = arith.constant 0 : i32
    %c0_i32_0 = arith.constant 0 : i32
    %c0_i32_1 = arith.constant 0 : i32
    return %c0_i32, %c0_i32_0 : i32, i32
  }
  func.func @transform_3(%arg0: i32) -> (i32, i32) {
    %c0_i32 = arith.constant 0 : i32
    %c0_i32_0 = arith.constant 0 : i32
    %c0_i32_1 = arith.constant 0 : i32
    return %c0_i32, %c0_i32_0 : i32, i32
  }
  func.func @transform_4(%arg0: i32) -> i32 {
    %c0_i32 = arith.constant 0 : i32
    %c0_i32_0 = arith.constant 0 : i32
    return %c0_i32 : i32
  }
  func.func @transform_5(%arg0: i32) -> (i32, i32) {
    %c0_i32 = arith.constant 0 : i32
    %c0_i32_0 = arith.constant 0 : i32
    return %c0_i32, %arg0 : i32, i32
  }
}

</mosaic_0001>

<bundles_post_ra>
// kernel: tpu_custom_call.1
= control target key start
LH: loop header
LB: loop body
LE: loop exit
PB: predicated region body
PF: predicated region fallthrough
CT: control target
= control target key end

     0   :  { %v1297_v2 = vmov 0   ;;  %v1298_v5 = vmov 1   ;;  %s1570_s0 = inlined_call_operand.vmem [shape: s32[128,2], index: 0, kind: input, shape index: {}]   ;;  %s1571_s1 = inlined_call_operand.vmem [shape: f32[16,32], index: 1, kind: input, shape index: {}]   ;;  %s1572_s2 = inlined_call_operand.vmem [shape: f32[16,32], index: 2, kind: input, shape index: {}]   ;;  %s1573_s3 = inlined_call_operand.vmem [shape: f32[2,32], index: 3, kind: input, shape index: {}]   ;;  %s1574_s4 = inlined_call_operand.<no memory space> [shape: f32[1], index: 4, kind: input, shape index: {}]   ;;  %s1575_s5 = inlined_call_operand.hbm [shape: f32[1,128], index: 5, kind: output, shape index: {}]  }
   0x1   :  { %v24_v0 = vld [vmem:[%s1570_s0 + $0x8] sm:$0xff]  ;;  %v23_v1 = vld [vmem:[%s1570_s0] sm:$0xff]  ;;  %1266 = vset.pattern.permute.xlu1 %v1297_v2  ;;  %1264 = vset.pattern.permute.xlu0 %v1297_v2 }
   0x2   :  { %51 = vperm.xlu1 %1266, %v24_v0   ;;  %48 = vperm.xlu0 %1264, %v23_v1   ;;  %v39_v3 = vld [vmem:[%s1571_s1] sm:$0xff]  ;;  %v40_v4 = vld [vmem:[%s1571_s1 + $0x8] sm:$0xff] }
   0x3   :  { %v1186_v6 = vpack.c.bf16 %v40_v4, %v39_v3  ;;  %v41_v7 = vld [vmem:[%s1572_s2] sm:$0xff]  ;;  %v42_v8 = vld [vmem:[%s1572_s2 + $0x8] sm:$0xff] }
   0x6   :  { %1267 = vset.pattern.permute.xlu1 %v1298_v5  ;;  %1265 = vset.pattern.permute.xlu0 %v1298_v5 }
   0x7   :  { %11 = vsyncpa [#allocation4], 0  ;;  %147 = vperm.xlu1 %1267, %v24_v0   ;;  %144 = vperm.xlu0 %1265, %v23_v1   ;;  %v1190_v9 = vpack.c.bf16 %v42_v8, %v41_v7  ;;  %v25_v10 = vld [vmem:[%s1570_s0 + $0x10] sm:$0xff]  ;;  %v26_v11 = vld [vmem:[%s1570_s0 + $0x18] sm:$0xff]  ;;  %v45_v24 = vlaneseq  ;;  %vm239_vm0 = vcmask 130048   ;;  %v1299_v28 = vmov 0.0  }
   0x8   :  { %1187 = vmatprep.subr.bf16.mxu0 %v1186_v6  ;;  %v27_v12 = vld [vmem:[%s1570_s0 + $0x20] sm:$0xff]  ;;  %v28_v13 = vld [vmem:[%s1570_s0 + $0x28] sm:$0xff]  ;;  %v29_v14 = vld [vmem:[%s1570_s0 + $0x30] sm:$0xff] }
   0x9   :  { %1189 = vmatpush3.bf16.msra.mxu0 %v1186_v6  ;;  %1191 = vmatprep.subr.bf16.mxu1 %v1190_v9  ;;  %v30_v15 = vld [vmem:[%s1570_s0 + $0x38] sm:$0xff]  ;;  %v31_v16 = vld [vmem:[%s1570_s0 + $0x40] sm:$0xff]  ;;  %v32_v17 = vld [vmem:[%s1570_s0 + $0x48] sm:$0xff]  ;;  %v1393_v25 = vand.u32 127, %v45_v24 }
   0xa   :  { %1193 = vmatpush3.bf16.msra.mxu1 %v1190_v9  ;;  %v33_v18 = vld [vmem:[%s1570_s0 + $0x50] sm:$0xff]  ;;  %v34_v19 = vld [vmem:[%s1570_s0 + $0x58] sm:$0xff]  ;;  %v35_v20 = vld [vmem:[%s1570_s0 + $0x60] sm:$0xff] }
   0xb   :  { %1268 = vset.pattern.permute.xlu1 %v1297_v2  ;;  %150 = vperm.xlu0 %1265, %v25_v10   ;;  %v36_v21 = vld [vmem:[%s1570_s0 + $0x68] sm:$0xff]  ;;  %v37_v22 = vld [vmem:[%s1570_s0 + $0x70] sm:$0xff]  ;;  %v38_v23 = vld [vmem:[%s1570_s0 + $0x78] sm:$0xff] }
   0xc   :  { %54 = vperm.xlu1 %1268, %v25_v10  }
   0xf   :  { %153 = vperm.xlu0 %1265, %v26_v11  }
  0x10   :  { %57 = vperm.xlu1 %1268, %v26_v11  }
  0x13   :  { %156 = vperm.xlu0 %1265, %v27_v12  }
  0x14   :  { %60 = vperm.xlu1 %1268, %v27_v12  }
  0x17   :  { %159 = vperm.xlu0 %1265, %v28_v13  }
  0x18   :  { %63 = vperm.xlu1 %1268, %v28_v13  }
  0x1b   :  { %162 = vperm.xlu0 %1265, %v29_v14  }
  0x1c   :  { %66 = vperm.xlu1 %1268, %v29_v14  }
  0x1f   :  { %165 = vperm.xlu0 %1265, %v30_v15  }
  0x20   :  { %69 = vperm.xlu1 %1268, %v30_v15  }
  0x23   :  { %168 = vperm.xlu0 %1265, %v31_v16  }
  0x24   :  { %72 = vperm.xlu1 %1268, %v31_v16  }
  0x27   :  { %171 = vperm.xlu0 %1265, %v32_v17  }
  0x28   :  { %75 = vperm.xlu1 %1268, %v32_v17  }
  0x2b   :  { %174 = vperm.xlu0 %1265, %v33_v18  }
  0x2c   :  { %78 = vperm.xlu1 %1268, %v33_v18  }
  0x2f   :  { %177 = vperm.xlu0 %1265, %v34_v19  }
  0x30   :  { %81 = vperm.xlu1 %1268, %v34_v19  }
  0x33   :  { %180 = vperm.xlu0 %1265, %v35_v20  }
  0x34   :  { %84 = vperm.xlu1 %1268, %v35_v20  }
  0x37   :  { %183 = vperm.xlu0 %1265, %v36_v21  }
  0x38   :  { %87 = vperm.xlu1 %1268, %v36_v21  }
  0x3b   :  { %186 = vperm.xlu0 %1265, %v37_v22  }
  0x3c   :  { %90 = vperm.xlu1 %1268, %v37_v22  }
  0x3f   :  { %189 = vperm.xlu0 %1265, %v38_v23  }
  0x40   :  { %93 = vperm.xlu1 %1268, %v38_v23  }
  0x81   :  { %v52_v26 = vpop.permute.xlu1 %51  ;;  %v49_v27 = vpop.permute.xlu0 %48 }
  0x82   :  { %vm96_vm1 = vcmp.eq.s32.totalorder %v1393_v25, %v52_v26  ;;  %vm95_vm2 = vcmp.eq.s32.totalorder %v1393_v25, %v49_v27 }
  0x83   :  { %v893_v29 = vsel %vm96_vm1, 1.0, %v1299_v28  ;;  %v892_v30 = vsel %vm95_vm2, 1.0, %v1299_v28 }
  0x84   :  { %1064 = vmatprep.mubr.msk.f32.mxu0 %vm239_vm0, %v892_v30 }
  0x85   :  { %1065 = vmatmul.mubr.msk.f32.vlgmr.msra.gmra.mrb[0].mxu0 %vm239_vm0, %v893_v29  ;;  %v1300_v29 = vmov 0.0|0.0  }
  0x86   :  { %v148_v31 = vpop.permute.xlu1 %147  ;;  %v145_v32 = vpop.permute.xlu0 %144  ;;  %1226 = vmatprep.subr.bf16.mxu1 %v1300_v29  ;;  %1194 = vmatprep.subr.bf16.mxu0 %v1300_v29 }
  0x87   :  { %vm192_vm3 = vcmp.eq.s32.totalorder %v1393_v25, %v148_v31  ;;  %vm191_vm4 = vcmp.eq.s32.totalorder %v1393_v25, %v145_v32 }
  0x88   :  { %v909_v33 = vsel %vm192_vm3, 1.0, %v1299_v28  ;;  %v908_v34 = vsel %vm191_vm4, 1.0, %v1299_v28 }
  0x89   :  { %1092 = vmatprep.mubr.msk.f32.mxu1 %vm239_vm0, %v908_v34 }
  0x8a   :  { %1093 = vmatmul.mubr.msk.f32.vlgmr.msra.gmra.mrb[0].mxu1 %vm239_vm0, %v909_v33  ;;  %v151_v35 = vpop.permute.xlu0 %150 }
  0x8b   :  { %vm193_vm5 = vcmp.eq.s32.totalorder %v1393_v25, %v151_v35  ;;  %v55_v36 = vpop.permute.xlu1 %54 }
  0x8c   :  { %v910_v37 = vsel %vm193_vm5, 1.0, %v1299_v28  ;;  %vm97_vm6 = vcmp.eq.s32.totalorder %v1393_v25, %v55_v36 }
  0x8d   :  { %v894_v38 = vsel %vm97_vm6, 1.0, %v1299_v28  ;;  %1095 = vmatprep.mubr.msk.f32.mxu1 %vm239_vm0, %v910_v37 }
  0x8e   :  { %1067 = vmatprep.mubr.msk.f32.mxu0 %vm239_vm0, %v894_v38  ;;  %v154_v39 = vpop.permute.xlu0 %153 }
  0x8f   :  { %vm194_vm7 = vcmp.eq.s32.totalorder %v1393_v25, %v154_v39  ;;  %v58_v40 = vpop.permute.xlu1 %57 }
  0x90   :  { %v911_v41 = vsel %vm194_vm7, 1.0, %v1299_v28  ;;  %vm98_vm8 = vcmp.eq.s32.totalorder %v1393_v25, %v58_v40 }
  0x91   :  { %v895_v42 = vsel %vm98_vm8, 1.0, %v1299_v28  ;;  %1096 = vmatmul.mubr.msk.f32.gmra.mrb[2].mxu1 %vm239_vm0, %v911_v41 }
  0x92   :  { %1068 = vmatmul.mubr.msk.f32.gmra.mrb[2].mxu0 %vm239_vm0, %v895_v42  ;;  %v157_v43 = vpop.permute.xlu0 %156 }
  0x93   :  { %vm195_vm9 = vcmp.eq.s32.totalorder %v1393_v25, %v157_v43  ;;  %v61_v44 = vpop.permute.xlu1 %60 }
  0x94   :  { %v912_v45 = vsel %vm195_vm9, 1.0, %v1299_v28  ;;  %vm99_vm10 = vcmp.eq.s32.totalorder %v1393_v25, %v61_v44 }
  0x95   :  { %v896_v46 = vsel %vm99_vm10, 1.0, %v1299_v28  ;;  %1098 = vmatprep.mubr.msk.f32.mxu1 %vm239_vm0, %v912_v45 }
  0x96   :  { %1070 = vmatprep.mubr.msk.f32.mxu0 %vm239_vm0, %v896_v46  ;;  %v160_v47 = vpop.permute.xlu0 %159 }
  0x97   :  { %vm196_vm11 = vcmp.eq.s32.totalorder %v1393_v25, %v160_v47  ;;  %v64_v48 = vpop.permute.xlu1 %63 }
  0x98   :  { %v913_v49 = vsel %vm196_vm11, 1.0, %v1299_v28  ;;  %vm100_vm12 = vcmp.eq.s32.totalorder %v1393_v25, %v64_v48 }
  0x99   :  { %v897_v50 = vsel %vm100_vm12, 1.0, %v1299_v28  ;;  %1099 = vmatmul.mubr.msk.f32.gmra.mrb[4].mxu1 %vm239_vm0, %v913_v49 }
  0x9a   :  { %1071 = vmatmul.mubr.msk.f32.gmra.mrb[4].mxu0 %vm239_vm0, %v897_v50  ;;  %v163_v51 = vpop.permute.xlu0 %162 }
  0x9b   :  { %vm197_vm13 = vcmp.eq.s32.totalorder %v1393_v25, %v163_v51  ;;  %v67_v52 = vpop.permute.xlu1 %66 }
  0x9c   :  { %v914_v53 = vsel %vm197_vm13, 1.0, %v1299_v28  ;;  %vm101_vm14 = vcmp.eq.s32.totalorder %v1393_v25, %v67_v52 }
  0x9d   :  { %v898_v54 = vsel %vm101_vm14, 1.0, %v1299_v28  ;;  %1101 = vmatprep.mubr.msk.f32.mxu1 %vm239_vm0, %v914_v53 }
  0x9e   :  { %1073 = vmatprep.mubr.msk.f32.mxu0 %vm239_vm0, %v898_v54  ;;  %v166_v55 = vpop.permute.xlu0 %165 }
  0x9f   :  { %vm198_vm15 = vcmp.eq.s32.totalorder %v1393_v25, %v166_v55  ;;  %v70_v56 = vpop.permute.xlu1 %69 }
  0xa0   :  { %v915_v57 = vsel %vm198_vm15, 1.0, %v1299_v28  ;;  %vm102_vm1 = vcmp.eq.s32.totalorder %v1393_v25, %v70_v56 }
  0xa1   :  { %v899_v58 = vsel %vm102_vm1, 1.0, %v1299_v28  ;;  %1102 = vmatmul.mubr.msk.f32.gmra.mrb[6].mxu1 %vm239_vm0, %v915_v57 }
  0xa2   :  { %1074 = vmatmul.mubr.msk.f32.gmra.mrb[6].mxu0 %vm239_vm0, %v899_v58  ;;  %v169_v59 = vpop.permute.xlu0 %168 }
  0xa3   :  { %vm199_vm2 = vcmp.eq.s32.totalorder %v1393_v25, %v169_v59  ;;  %v73_v60 = vpop.permute.xlu1 %72 }
  0xa4   :  { %v916_v61 = vsel %vm199_vm2, 1.0, %v1299_v28  ;;  %vm103_vm3 = vcmp.eq.s32.totalorder %v1393_v25, %v73_v60 }
  0xa5   :  { %v900_v62 = vsel %vm103_vm3, 1.0, %v1299_v28  ;;  %1104 = vmatprep.mubr.msk.f32.mxu1 %vm239_vm0, %v916_v61  ;;  %vm1301_vm3 = vmmov 0  }
  0xa6   :  { %1076 = vmatprep.mubr.msk.f32.mxu0 %vm239_vm0, %v900_v62  ;;  %v172_v63 = vpop.permute.xlu0 %171 }
  0xa7   :  { %vm200_vm4 = vcmp.eq.s32.totalorder %v1393_v25, %v172_v63  ;;  %v76_v0 = vpop.permute.xlu1 %75 }
  0xa8   :  { %v917_v1 = vsel %vm200_vm4, 1.0, %v1299_v28  ;;  %vm104_vm5 = vcmp.eq.s32.totalorder %v1393_v25, %v76_v0  ;;  %vm626_vm4 = vcmask 261120  }
  0xa9   :  { %v901_v2 = vsel %vm104_vm5, 1.0, %v1299_v28  ;;  %1105 = vmatmul.mubr.msk.f32.gmra.mrb[8].mxu1 %vm239_vm0, %v917_v1  ;;  %vm1497_vm5 = vmpackc.low %vm626_vm4, %vm626_vm4 }
  0xaa   :  { %1077 = vmatmul.mubr.msk.f32.gmra.mrb[8].mxu0 %vm239_vm0, %v901_v2  ;;  %v175_v3 = vpop.permute.xlu0 %174 }
  0xab   :  { %vm201_vm6 = vcmp.eq.s32.totalorder %v1393_v25, %v175_v3  ;;  %v79_v4 = vpop.permute.xlu1 %78 }
  0xac   :  { %v918_v5 = vsel %vm201_vm6, 1.0, %v1299_v28  ;;  %vm105_vm7 = vcmp.eq.s32.totalorder %v1393_v25, %v79_v4 }
  0xad   :  { %v902_v6 = vsel %vm105_vm7, 1.0, %v1299_v28  ;;  %1107 = vmatprep.mubr.msk.f32.mxu1 %vm239_vm0, %v918_v5 }
  0xae   :  { %1079 = vmatprep.mubr.msk.f32.mxu0 %vm239_vm0, %v902_v6  ;;  %v178_v7 = vpop.permute.xlu0 %177 }
  0xaf   :  { %vm202_vm8 = vcmp.eq.s32.totalorder %v1393_v25, %v178_v7  ;;  %v82_v8 = vpop.permute.xlu1 %81 }
  0xb0   :  { %v919_v9 = vsel %vm202_vm8, 1.0, %v1299_v28  ;;  %vm106_vm9 = vcmp.eq.s32.totalorder %v1393_v25, %v82_v8 }
  0xb1   :  { %v903_v10 = vsel %vm106_vm9, 1.0, %v1299_v28  ;;  %1108 = vmatmul.mubr.msk.f32.gmra.mrb[10].mxu1 %vm239_vm0, %v919_v9 }
  0xb2   :  { %1080 = vmatmul.mubr.msk.f32.gmra.mrb[10].mxu0 %vm239_vm0, %v903_v10  ;;  %v181_v11 = vpop.permute.xlu0 %180 }
  0xb3   :  { %vm203_vm10 = vcmp.eq.s32.totalorder %v1393_v25, %v181_v11  ;;  %v85_v12 = vpop.permute.xlu1 %84 }
  0xb4   :  { %v920_v13 = vsel %vm203_vm10, 1.0, %v1299_v28  ;;  %vm107_vm11 = vcmp.eq.s32.totalorder %v1393_v25, %v85_v12 }
  0xb5   :  { %v904_v14 = vsel %vm107_vm11, 1.0, %v1299_v28  ;;  %1110 = vmatprep.mubr.msk.f32.mxu1 %vm239_vm0, %v920_v13  ;;  %v44_v13 = vld [vmem:[%s1573_s3 + $0x1] sm:$0x1] }
  0xb6   :  { %1082 = vmatprep.mubr.msk.f32.mxu0 %vm239_vm0, %v904_v14  ;;  %v184_v15 = vpop.permute.xlu0 %183  ;;  %v43_v14 = vld [vmem:[%s1573_s3] sm:$0x1]  ;;  %s1302_s3 = smov [#allocation3]  }
  0xb7   :  { %vm204_vm12 = vcmp.eq.s32.totalorder %v1393_v25, %v184_v15  ;;  %v88_v16 = vpop.permute.xlu1 %87  ;;  %s884_s9 = sshll.u32 %s1302_s3, 4  ;;  %s885_s9 = int_to_ptr.vmem [resolvable:$true] %s884_s9 }
  0xb8   :  { %v921_v17 = vsel %vm204_vm12, 1.0, %v1299_v28  ;;  %vm108_vm13 = vcmp.eq.s32.totalorder %v1393_v25, %v88_v16  ;;  %s1273_s10 = scalar_lea.vmem %s885_s9, 16  ;;  %s1277_s11 = scalar_lea.vmem %s885_s9, 32 }
  0xb9   :  { %v905_v18 = vsel %vm108_vm13, 1.0, %v1299_v28  ;;  %1111 = vmatmul.mubr.msk.f32.gmra.mrb[12].mxu1 %vm239_vm0, %v921_v17  ;;  %v869_v17 = vstv %s1574_s4  ;;  %p1274_p0 = scmp.ne.s32.totalorder %s885_s9, %s1273_s10  ;;  %p1278_p1 = scmp.lt.s32.totalorder %s885_s9, %s885_s9 }
  0xba   :  { %1083 = vmatmul.mubr.msk.f32.gmra.mrb[12].mxu0 %vm239_vm0, %v905_v18  ;;  %v187_v19 = vpop.permute.xlu0 %186  ;;  %p1279_p2 = scmp.lt.s32.totalorder %s1277_s11, %s1273_s10 }
  0xbb   :  { %vm205_vm14 = vcmp.eq.s32.totalorder %v1393_v25, %v187_v19  ;;  %v91_v20 = vpop.permute.xlu1 %90 }
  0xbc   :  { %v922_v21 = vsel %vm205_vm14, 1.0, %v1299_v28  ;;  %vm109_vm15 = vcmp.eq.s32.totalorder %v1393_v25, %v91_v20  ;;  %p1280_p3 = por %p1279_p2, %p1278_p1 }
  0xbd   :  { %v906_v22 = vsel %vm109_vm15, 1.0, %v1299_v28  ;;  %1113 = vmatprep.mubr.msk.f32.mxu1 %vm239_vm0, %v922_v21 }
  0xbe   :  { %1085 = vmatprep.mubr.msk.f32.mxu0 %vm239_vm0, %v906_v22  ;;  %v190_v23 = vpop.permute.xlu0 %189  ;;  %p1281_p4 = pnand %p1280_p3, %p1274_p0 }
  0xbf   :  { %vm206_vm1 = vcmp.eq.s32.totalorder %v1393_v25, %v190_v23  ;;  %v94_v24 = vpop.permute.xlu1 %93 }
  0xc0   :  { %v923_v26 = vsel %vm206_vm1, 1.0, %v1299_v28  ;;  %vm110_vm2 = vcmp.eq.s32.totalorder %v1393_v25, %v94_v24 }
  0xc1   :  { %v907_v27 = vsel %vm110_vm2, 1.0, %v1299_v28  ;;  %1114 = vmatmul.mubr.msk.f32.gmra.mrb[14].mxu1 %vm239_vm0, %v923_v26 }
  0xc2   :  { %1086 = vmatmul.mubr.msk.f32.gmra.mrb[14].mxu0 %vm239_vm0, %v907_v27  ;;  %1183 = vmatprep.mubr.msk.f32.mxu1 %vm1301_vm3, %v1299_v28 }
  0xc3   :  { %1148 = vmatprep.mubr.msk.f32.mxu0 %vm1301_vm3, %v1299_v28 }
 0x158   :  { %v1066_v30 = vpop.f32.mrb[0].mxu0 }
 0x159   :  { %v354_v31 = vpop.f32.mrb[1].mxu0 }
 0x15a   :  { %v1227_v32 = vpack.c.bf16 %v1066_v30, %v354_v31 }
 0x15c   :  { %1229 = vmatpush3.bf16.xpose.msk.msra.mxu1 %vm1497_vm5, %v1227_v32 }
 0x15d   :  { %v1094_v33 = vpop.f32.mrb[0].mxu1  ;;  %1230 = vmatprep.subr.bf16.mxu1 %v1300_v29 }
 0x15e   :  { %v547_v34 = vpop.f32.mrb[1].mxu1 }
 0x15f   :  { %v1195_v35 = vpack.c.bf16 %v1094_v33, %v547_v34 }
 0x161   :  { %1197 = vmatpush3.bf16.xpose.msk.msra.mxu0 %vm1497_vm5, %v1195_v35 }
 0x162   :  { %1198 = vmatprep.subr.bf16.mxu0 %v1300_v29 }
 0x164   :  { %v1097_v28 = vpop.f32.mrb[2].mxu1 }
 0x165   :  { %v1069_v36 = vpop.f32.mrb[2].mxu0  ;;  %v557_v37 = vpop.f32.mrb[3].mxu1 }
 0x166   :  { %v1199_v38 = vpack.c.bf16 %v1097_v28, %v557_v37  ;;  %v364_v39 = vpop.f32.mrb[3].mxu0 }
 0x167   :  { %v1231_v40 = vpack.c.bf16 %v1069_v36, %v364_v39 }
 0x169   :  { %1201 = vmatpush3.bf16.xpose.msk.msra.mxu0 %vm1497_vm5, %v1199_v38  ;;  %1233 = vmatpush3.bf16.xpose.msk.msra.mxu1 %vm1497_vm5, %v1231_v40 }
 0x16a   :  { %1202 = vmatprep.subr.bf16.mxu0 %v1300_v29  ;;  %1234 = vmatprep.subr.bf16.mxu1 %v1300_v29 }
 0x16c   :  { %v1100_v41 = vpop.f32.mrb[4].mxu1 }
 0x16d   :  { %v1072_v42 = vpop.f32.mrb[4].mxu0  ;;  %v567_v43 = vpop.f32.mrb[5].mxu1 }
 0x16e   :  { %v1203_v44 = vpack.c.bf16 %v1100_v41, %v567_v43  ;;  %v374_v45 = vpop.f32.mrb[5].mxu0 }
 0x16f   :  { %v1235_v46 = vpack.c.bf16 %v1072_v42, %v374_v45 }
 0x171   :  { %1205 = vmatpush3.bf16.xpose.msk.msra.mxu0 %vm1497_vm5, %v1203_v44  ;;  %1237 = vmatpush3.bf16.xpose.msk.msra.mxu1 %vm1497_vm5, %v1235_v46 }
 0x172   :  { %1206 = vmatprep.subr.bf16.mxu0 %v1300_v29  ;;  %1238 = vmatprep.subr.bf16.mxu1 %v1300_v29 }
 0x174   :  { %v1103_v47 = vpop.f32.mrb[6].mxu1 }
 0x175   :  { %v1075_v48 = vpop.f32.mrb[6].mxu0  ;;  %v577_v49 = vpop.f32.mrb[7].mxu1 }
 0x176   :  { %v1207_v50 = vpack.c.bf16 %v1103_v47, %v577_v49  ;;  %v384_v51 = vpop.f32.mrb[7].mxu0 }
 0x177   :  { %v1239_v52 = vpack.c.bf16 %v1075_v48, %v384_v51 }
 0x179   :  { %1209 = vmatpush3.bf16.xpose.msk.msra.mxu0 %vm1497_vm5, %v1207_v50  ;;  %1241 = vmatpush3.bf16.xpose.msk.msra.mxu1 %vm1497_vm5, %v1239_v52 }
 0x17a   :  { %1210 = vmatprep.subr.bf16.mxu0 %v1300_v29  ;;  %1242 = vmatprep.subr.bf16.mxu1 %v1300_v29 }
 0x17c   :  { %v1106_v53 = vpop.f32.mrb[8].mxu1 }
 0x17d   :  { %v1078_v54 = vpop.f32.mrb[8].mxu0  ;;  %v587_v55 = vpop.f32.mrb[9].mxu1 }
 0x17e   :  { %v1211_v56 = vpack.c.bf16 %v1106_v53, %v587_v55  ;;  %v394_v57 = vpop.f32.mrb[9].mxu0 }
 0x17f   :  { %v1243_v58 = vpack.c.bf16 %v1078_v54, %v394_v57 }
 0x181   :  { %1213 = vmatpush3.bf16.xpose.msk.msra.mxu0 %vm1497_vm5, %v1211_v56  ;;  %1245 = vmatpush3.bf16.xpose.msk.msra.mxu1 %vm1497_vm5, %v1243_v58 }
 0x182   :  { %1214 = vmatprep.subr.bf16.mxu0 %v1300_v29  ;;  %1246 = vmatprep.subr.bf16.mxu1 %v1300_v29 }
 0x184   :  { %v1109_v59 = vpop.f32.mrb[10].mxu1 }
 0x185   :  { %v1081_v60 = vpop.f32.mrb[10].mxu0  ;;  %v597_v61 = vpop.f32.mrb[11].mxu1 }
 0x186   :  { %v1215_v62 = vpack.c.bf16 %v1109_v59, %v597_v61  ;;  %v404_v63 = vpop.f32.mrb[11].mxu0 }
 0x187   :  { %v1247_v0 = vpack.c.bf16 %v1081_v60, %v404_v63 }
 0x189   :  { %1217 = vmatpush3.bf16.xpose.msk.msra.mxu0 %vm1497_vm5, %v1215_v62  ;;  %1249 = vmatpush3.bf16.xpose.msk.msra.mxu1 %vm1497_vm5, %v1247_v0 }
 0x18a   :  { %1218 = vmatprep.subr.bf16.mxu0 %v1300_v29  ;;  %1250 = vmatprep.subr.bf16.mxu1 %v1300_v29 }
 0x18c   :  { %v1112_v1 = vpop.f32.mrb[12].mxu1 }
 0x18d   :  { %v1084_v2 = vpop.f32.mrb[12].mxu0  ;;  %v607_v3 = vpop.f32.mrb[13].mxu1 }
 0x18e   :  { %v1219_v4 = vpack.c.bf16 %v1112_v1, %v607_v3  ;;  %v414_v5 = vpop.f32.mrb[13].mxu0 }
 0x18f   :  { %v1251_v6 = vpack.c.bf16 %v1084_v2, %v414_v5 }
 0x191   :  { %1221 = vmatpush3.bf16.xpose.msk.msra.mxu0 %vm1497_vm5, %v1219_v4  ;;  %1253 = vmatpush3.bf16.xpose.msk.msra.mxu1 %vm1497_vm5, %v1251_v6 }
 0x192   :  { %1222 = vmatprep.subr.bf16.mxu0 %v1300_v29  ;;  %1254 = vmatprep.subr.bf16.mxu1 %v1300_v29 }
 0x194   :  { %v1115_v7 = vpop.f32.mrb[14].mxu1 }
 0x195   :  { %v1087_v8 = vpop.f32.mrb[14].mxu0  ;;  %v617_v9 = vpop.f32.mrb[15].mxu1 }
 0x196   :  { %v1223_v10 = vpack.c.bf16 %v1115_v7, %v617_v9  ;;  %v424_v11 = vpop.f32.mrb[15].mxu0 }
 0x197   :  { %v1255_v12 = vpack.c.bf16 %v1087_v8, %v424_v11 }
 0x199   :  { %1225 = vmatpush3.bf16.xpose.msk.msra.mxu0 %vm1497_vm5, %v1223_v10  ;;  %1257 = vmatpush3.bf16.xpose.msk.msra.mxu1 %vm1497_vm5, %v1255_v12 }
 0x1a0   :  { %1149 = vmatmul.mubr.msk.f32.vlgmr.msra.gmra.mrb[16].mxu0 %vm626_vm4, %v44_v13  ;;  %1184 = vmatmul.mubr.msk.f32.vlgmr.msra.gmra.mrb[16].mxu1 %vm626_vm4, %v43_v14 }
 0x273   :  { %v744_v15 = vpop.f32.mrb[16].mxu0  ;;  %v865_v16 = vpop.f32.mrb[16].mxu1 }
 0x274   :  { %v866_v18 = vadd.f32 %v865_v16, %v744_v15  ;;  %v1150_v19 = vpop.f32.mrb[17].mxu0  ;;  %v1185_v20 = vpop.f32.mrb[17].mxu1 }
 0x276   :  { %v870_v21 = vadd.f32 %v869_v17, %v866_v18 }
 0x278   :  { %v871_v22 = vsub.f32 0.0, %v870_v21 }
 0x27a   :  { %v872_v23 = vmul.f32 1.442695, %v871_v22 }
 0x27c   :  { %1269 = vpow2.f32 %v872_v23 }
 0x286   :  { %v1270_v24 = vpop.eup %1269 }
 0x287   :  { %v874_v26 = vadd.f32 1.0, %v1270_v24 }
 0x289   :  { %1271 = vrcp.f32 %v874_v26 }
 0x293   :  { %v1272_v27 = vpop.eup %1271 }
 0x294   :  { %877 = vst [vmem:[#allocation3] sm:$0x1] %v1272_v27 }
 0x295   :  { %1284 = shalt.err (!%p1281_p4)
}
 0x296   :  { %s1285_s13 = scalar_lea.hbm %s1575_s5, 16 }
 0x297   :  { %p1286_p5 = scmp.ne.s32.totalorder %s1575_s5, %s1285_s13  ;;  %p1289_p6 = scmp.lt.u32.totalorder %s1285_s13, %s1575_s5 }
 0x299   :  { %p1291_p7 = pnand %p1289_p6, %p1286_p5 }
 0x29b   :  { %1294 = shalt.err (!%p1291_p7)
}
 0x29c   :  { %887 = dma.vmem_to_hbm [thread:$0]  %s885_s9, 16, %s1575_s5, [#allocation4]  }
 0x29d   :  { %1295 = dma.done.wait [#allocation4], 16  }
 0x29e   :  { %1296 = vsyncadd [#allocation4], 4294967280 }
 0x29f   :  { %891 = vsyncpa [#allocation4], 1 }

</bundles_post_ra>
